<compile_context>
chip_gen: v7x
topology: tpu7x:2x2x1
jax: 0.10.0
libtpu: 0.0.40
codegen_flags: <defaults>
</compile_context>

<pallas_src>
import jax
import jax.numpy as jnp
from jax.experimental import pallas as pl
from jax.experimental.pallas import tpu as pltpu


def _round_up(x, m):
    return ((x + m - 1) // m) * m


def critic_mlp_kernel(st_ref, at_ref, w1s_ref, w1a_ref, b1_ref,
                      w2_ref, b2_ref, w3_ref, b3_ref, out_ref):
    """Batch-on-lanes MLP: every activation is (features, batch_tile)."""
    # Cast MXU operands to bf16 in-kernel (no wrapper-side cast pass over HBM).
    s = st_ref[...].astype(w1s_ref.dtype)          # (S, tb)
    a = at_ref[...].astype(w1a_ref.dtype)          # (A, tb)

    # Layer 1: relu(W1s^T @ state^T + W1a^T @ action^T + b1) -> (d0, tb).
    # Two merged matmuls replace the concat; f32 accumulation on the MXU.
    h = jnp.dot(w1s_ref[...], s, preferred_element_type=jnp.float32)
    h = h + jnp.dot(w1a_ref[...], a, preferred_element_type=jnp.float32)
    h = jnp.maximum(h + b1_ref[...], 0.0)

    # Layer 2: relu(W2^T @ h + b2) -> (d1, tb).
    h = jnp.dot(w2_ref[...], h.astype(w2_ref.dtype),
                preferred_element_type=jnp.float32)
    h = jnp.maximum(h + b2_ref[...], 0.0)

    # Layer 3 head (build_mlp drops the final ReLU): (1, d1) @ (d1, tb) gives a
    # naturally lane-dense (1, tb) row -> unmasked full-width stores.
    q = jnp.dot(w3_ref[...], h, preferred_element_type=jnp.float32)
    out_ref[...] = (q + b3_ref[...]).astype(out_ref.dtype)


def critic_forward(state, action, params, *, block_b=1024,
                   compute_dtype=jnp.bfloat16):
    """Pallas forward pass: Q = MLP(concat(state, action))."""
    w1, b1, w2, b2, w3, b3 = params
    B, S = state.shape
    A = action.shape[1]
    K = S + A
    d0 = w1.shape[1]
    d1 = w2.shape[1]
    out_dtype = state.dtype

    # Batch-on-lanes operands.  Weight reshapes/casts are tiny one-time ops.
    st = state.T                                    # (S, B)
    at = action.T                                   # (A, B)
    w1s_t = w1[:S].T.astype(compute_dtype)          # (d0, S)  state rows of W1
    w1a_t = w1[S:].T.astype(compute_dtype)          # (d0, A)  action rows of W1
    w2_t = w2.T.astype(compute_dtype)               # (d1, d0)
    b1c = b1.reshape(d0, 1).astype(jnp.float32)     # (d0, 1)
    b2c = b2.reshape(d1, 1).astype(jnp.float32)     # (d1, 1)
    w3r = w3.reshape(1, d1).astype(jnp.float32)     # (1, d1)
    b3c = b3.reshape(1, 1).astype(jnp.float32)      # (1, 1)

    # Batch tile: as large as reasonable (amortizes the ~0.35 us/step fixed
    # overhead), a multiple of 128 when tiled (lane-dense blocks), and >= 2 grid
    # steps for larger batches so both v7x TensorCores get work.  The resident
    # footprint at tb=1024 is well under 1 MiB, so VMEM never binds.
    if B <= 256:
        tb = B                                      # single tile == full dims
    else:
        tb = min(block_b, _round_up(pl.cdiv(B, 2), 128))
    grid_b = pl.cdiv(B, tb)                         # ragged last tile is masked

    flops = 2 * B * (K * d0 + d0 * d1 + d1)
    bytes_accessed = int(
        B * K * 4                                   # state + action (f32)
        + (K * d0 + d0 * d1) * 2                    # W1, W2 (bf16)
        + (d0 + d1 + d1 + 1) * 4                    # b1, b2, w3, b3 (f32)
        + B * jnp.dtype(out_dtype).itemsize)        # Q output

    const = lambda i: (0, 0)
    q_row = pl.pallas_call(
        critic_mlp_kernel,
        grid=(grid_b,),
        in_specs=[
            pl.BlockSpec((S, tb), lambda i: (0, i)),    # state^T batch tile
            pl.BlockSpec((A, tb), lambda i: (0, i)),    # action^T batch tile
            pl.BlockSpec((d0, S), const),               # W1 (state rows)^T, resident
            pl.BlockSpec((d0, A), const),               # W1 (action rows)^T
            pl.BlockSpec((d0, 1), const),               # b1
            pl.BlockSpec((d1, d0), const),              # W2^T
            pl.BlockSpec((d1, 1), const),               # b2
            pl.BlockSpec((1, d1), const),               # w3 as a row
            pl.BlockSpec((1, 1), const),                # b3
        ],
        out_specs=pl.BlockSpec((1, tb), lambda i: (0, i)),
        out_shape=jax.ShapeDtypeStruct((1, B), out_dtype),
        compiler_params=pltpu.CompilerParams(
            dimension_semantics=("parallel",),          # batch tiles independent
            vmem_limit_bytes=32 * 1024 * 1024),
        cost_estimate=pl.CostEstimate(
            flops=flops, transcendentals=0, bytes_accessed=bytes_accessed),
    )(st, at, w1s_t, w1a_t, b1c, w2_t, b2c, w3r, b3c)

    # (1, B) row-major has the same element order as (B, 1): free reshape.
    return q_row.reshape(B, 1)


def init_critic_params(key, state_dim, action_dim, dims):
    """Deterministic init matching PyTorch nn.Linear shapes.

    Layers: Linear(state_dim+action_dim, dims[0]) -> ReLU
            -> Linear(dims[0], dims[1]) -> ReLU -> Linear(dims[1], 1)
    Weights stored as (in_features, out_features); biases as (1, out_features).
    """
    in0 = state_dim + action_dim
    layer_dims = [in0, *dims, 1]
    keys = jax.random.split(key, 2 * (len(layer_dims) - 1))
    params = []
    for li in range(len(layer_dims) - 1):
        fan_in, fan_out = layer_dims[li], layer_dims[li + 1]
        bound = 1.0 / (float(fan_in) ** 0.5)
        w = jax.random.uniform(keys[2 * li], (fan_in, fan_out),
                               jnp.float32, -bound, bound)
        b = jax.random.uniform(keys[2 * li + 1], (1, fan_out),
                               jnp.float32, -bound, bound)
        params += [w, b]
    return tuple(params)   # (w1, b1, w2, b2, w3, b3)


def critic_reference(state, action, params):
    """Pure-JAX f32 reference for correctness check."""
    w1, b1, w2, b2, w3, b3 = params
    x = jnp.concatenate([state, action], axis=1)
    h = jnp.maximum(x @ w1 + b1, 0.0)
    h = jnp.maximum(h @ w2 + b2, 0.0)
    return h @ w3 + b3


if __name__ == "__main__":
    state_dim = 16
    action_dim = 16
    dims = (32, 32)

    key = jax.random.PRNGKey(0)
    k_params, k_state, k_action = jax.random.split(key, 3)
    params = init_critic_params(k_params, state_dim, action_dim, dims)

    # Small demo batch: single-tile path.
    batch = 8
    state = jax.random.normal(k_state, (batch, state_dim), jnp.float32)
    action = jax.random.normal(k_action, (batch, action_dim), jnp.float32)
    q = jax.block_until_ready(critic_forward(state, action, params))
    q_ref = critic_reference(state, action, params)
    assert q.shape == (batch, 1)
    # bf16 matmul operands vs f32 reference -> widened tolerance
    assert jnp.allclose(q, q_ref, atol=3e-2, rtol=3e-2)

    # Larger batch: exercises the tiled path (>= 2 grid steps, 128-multiple
    # tiles, masked ragged final tile).
    batch2 = 300
    state2 = jax.random.normal(k_state, (batch2, state_dim), jnp.float32)
    action2 = jax.random.normal(k_action, (batch2, action_dim), jnp.float32)
    q2 = jax.block_until_ready(critic_forward(state2, action2, params))
    q2_ref = critic_reference(state2, action2, params)
    assert q2.shape == (batch2, 1)
    assert jnp.allclose(q2, q2_ref, atol=3e-2, rtol=3e-2)

    print("KERNEL_OK")
</pallas_src>

<mosaic_0001>
module attributes {stable_mosaic.version = 11 : i64} {
  func.func @critic_mlp_kernel(%arg0: i32, %arg1: memref<16x8xf32, #tpu.memory_space<vmem>>, %arg2: memref<16x8xf32, #tpu.memory_space<vmem>>, %arg3: memref<32x16xbf16, #tpu.memory_space<vmem>>, %arg4: memref<32x16xbf16, #tpu.memory_space<vmem>>, %arg5: memref<32x1xf32, #tpu.memory_space<vmem>>, %arg6: memref<32x32xbf16, #tpu.memory_space<vmem>>, %arg7: memref<32x1xf32, #tpu.memory_space<vmem>>, %arg8: memref<1x32xf32, #tpu.memory_space<vmem>>, %arg9: memref<1x1xf32, #tpu.memory_space<vmem>>, %arg10: memref<1x8xf32, #tpu.memory_space<vmem>>) attributes {dimension_semantics = [#tpu.dimension_semantics<parallel>], iteration_bounds = array<i64: 1>, scalar_prefetch = 0 : i64, scratch_operands = 0 : i64, tpu.core_type = #tpu.core_type<tc>, window_params = [{transform_indices = @transform_0, window_bounds = array<i64: 16, 8>}, {transform_indices = @transform_1, window_bounds = array<i64: 16, 8>}, {pipeline_mode = #tpu.pipeline_mode<synchronous>, transform_indices = @transform_2, window_bounds = array<i64: 32, 16>}, {pipeline_mode = #tpu.pipeline_mode<synchronous>, transform_indices = @transform_3, window_bounds = array<i64: 32, 16>}, {pipeline_mode = #tpu.pipeline_mode<synchronous>, transform_indices = @transform_4, window_bounds = array<i64: 32, 1>}, {pipeline_mode = #tpu.pipeline_mode<synchronous>, transform_indices = @transform_5, window_bounds = array<i64: 32, 32>}, {pipeline_mode = #tpu.pipeline_mode<synchronous>, transform_indices = @transform_6, window_bounds = array<i64: 32, 1>}, {pipeline_mode = #tpu.pipeline_mode<synchronous>, transform_indices = @transform_7, window_bounds = array<i64: 1, 32>}, {pipeline_mode = #tpu.pipeline_mode<synchronous>, transform_indices = @transform_8, window_bounds = array<i64: 1, 1>}, {transform_indices = @transform_9, window_bounds = array<i64: 1, 8>}]} {
    %c0 = arith.constant 0 : index
    %c0_0 = arith.constant 0 : index
    %0 = vector.load %arg1[%c0, %c0_0] : memref<16x8xf32, #tpu.memory_space<vmem>>, vector<16x8xf32>
    %1 = arith.truncf %0 : vector<16x8xf32> to vector<16x8xbf16>
    %c0_1 = arith.constant 0 : index
    %c0_2 = arith.constant 0 : index
    %2 = vector.load %arg2[%c0_1, %c0_2] : memref<16x8xf32, #tpu.memory_space<vmem>>, vector<16x8xf32>
    %3 = arith.truncf %2 : vector<16x8xf32> to vector<16x8xbf16>
    %c0_3 = arith.constant 0 : index
    %c0_4 = arith.constant 0 : index
    %4 = vector.load %arg3[%c0_3, %c0_4] : memref<32x16xbf16, #tpu.memory_space<vmem>>, vector<32x16xbf16>
    %cst = arith.constant dense<0.000000e+00> : vector<32x8xf32>
    %5 = tpu.matmul %4, %1, %cst {dimension_numbers = #tpu.dot_dimension_numbers<[1], [0], [0], [1], [0, 0, 1, 1], [], []>} : vector<32x16xbf16>, vector<16x8xbf16>, vector<32x8xf32> -> vector<32x8xf32>
    %c0_5 = arith.constant 0 : index
    %c0_6 = arith.constant 0 : index
    %6 = vector.load %arg4[%c0_5, %c0_6] : memref<32x16xbf16, #tpu.memory_space<vmem>>, vector<32x16xbf16>
    %cst_7 = arith.constant dense<0.000000e+00> : vector<32x8xf32>
    %7 = tpu.matmul %6, %3, %cst_7 {dimension_numbers = #tpu.dot_dimension_numbers<[1], [0], [0], [1], [0, 0, 1, 1], [], []>} : vector<32x16xbf16>, vector<16x8xbf16>, vector<32x8xf32> -> vector<32x8xf32>
    %8 = arith.addf %5, %7 : vector<32x8xf32>
    %c0_8 = arith.constant 0 : index
    %c0_9 = arith.constant 0 : index
    %9 = vector.load %arg5[%c0_8, %c0_9] : memref<32x1xf32, #tpu.memory_space<vmem>>, vector<32x1xf32>
    %10 = vector.broadcast %9 : vector<32x1xf32> to vector<32x8xf32>
    %11 = arith.addf %8, %10 : vector<32x8xf32>
    %cst_10 = arith.constant 0.000000e+00 : f32
    %12 = vector.broadcast %cst_10 : f32 to vector<32x8xf32>
    %13 = arith.maximumf %11, %12 : vector<32x8xf32>
    %c0_11 = arith.constant 0 : index
    %c0_12 = arith.constant 0 : index
    %14 = vector.load %arg6[%c0_11, %c0_12] : memref<32x32xbf16, #tpu.memory_space<vmem>>, vector<32x32xbf16>
    %15 = arith.truncf %13 : vector<32x8xf32> to vector<32x8xbf16>
    %cst_13 = arith.constant dense<0.000000e+00> : vector<32x8xf32>
    %16 = tpu.matmul %14, %15, %cst_13 {dimension_numbers = #tpu.dot_dimension_numbers<[1], [0], [0], [1], [0, 0, 1, 1], [], []>} : vector<32x32xbf16>, vector<32x8xbf16>, vector<32x8xf32> -> vector<32x8xf32>
    %c0_14 = arith.constant 0 : index
    %c0_15 = arith.constant 0 : index
    %17 = vector.load %arg7[%c0_14, %c0_15] : memref<32x1xf32, #tpu.memory_space<vmem>>, vector<32x1xf32>
    %18 = vector.broadcast %17 : vector<32x1xf32> to vector<32x8xf32>
    %19 = arith.addf %16, %18 : vector<32x8xf32>
    %cst_16 = arith.constant 0.000000e+00 : f32
    %20 = vector.broadcast %cst_16 : f32 to vector<32x8xf32>
    %21 = arith.maximumf %19, %20 : vector<32x8xf32>
    %c0_17 = arith.constant 0 : index
    %c0_18 = arith.constant 0 : index
    %22 = vector.load %arg8[%c0_17, %c0_18] : memref<1x32xf32, #tpu.memory_space<vmem>>, vector<1x32xf32>
    %cst_19 = arith.constant dense<0.000000e+00> : vector<1x8xf32>
    %23 = tpu.matmul %22, %21, %cst_19 {dimension_numbers = #tpu.dot_dimension_numbers<[1], [0], [0], [1], [0, 0, 1, 1], [], []>} : vector<1x32xf32>, vector<32x8xf32>, vector<1x8xf32> -> vector<1x8xf32>
    %c0_20 = arith.constant 0 : index
    %c0_21 = arith.constant 0 : index
    %24 = vector.load %arg9[%c0_20, %c0_21] : memref<1x1xf32, #tpu.memory_space<vmem>>, vector<1x1xf32>
    %25 = vector.broadcast %24 : vector<1x1xf32> to vector<1x8xf32>
    %26 = arith.addf %23, %25 : vector<1x8xf32>
    %c0_22 = arith.constant 0 : index
    %c0_23 = arith.constant 0 : index
    %27 = vector.load %arg10[%c0_22, %c0_23] : memref<1x8xf32, #tpu.memory_space<vmem>>, vector<1x8xf32>
    tpu.vector_store %arg10[%c0_22, %c0_23], %26 {strides = array<i32>} : memref<1x8xf32, #tpu.memory_space<vmem>>, vector<1x8xf32>,
    return
  }
  func.func @transform_0(%arg0: i32) -> (i32, i32) {
    %c0_i32 = arith.constant 0 : i32
    %c0_i32_0 = arith.constant 0 : i32
    return %c0_i32, %arg0 : i32, i32
  }
  func.func @transform_1(%arg0: i32) -> (i32, i32) {
    %c0_i32 = arith.constant 0 : i32
    %c0_i32_0 = arith.constant 0 : i32
    return %c0_i32, %arg0 : i32, i32
  }
  func.func @transform_2(%arg0: i32) -> (i32, i32) {
    %c0_i32 = arith.constant 0 : i32
    %c0_i32_0 = arith.constant 0 : i32
    %c0_i32_1 = arith.constant 0 : i32
    return %c0_i32, %c0_i32_0 : i32, i32
  }
  func.func @transform_3(%arg0: i32) -> (i32, i32) {
    %c0_i32 = arith.constant 0 : i32
    %c0_i32_0 = arith.constant 0 : i32
    %c0_i32_1 = arith.constant 0 : i32
    return %c0_i32, %c0_i32_0 : i32, i32
  }
  func.func @transform_4(%arg0: i32) -> (i32, i32) {
    %c0_i32 = arith.constant 0 : i32
    %c0_i32_0 = arith.constant 0 : i32
    %c0_i32_1 = arith.constant 0 : i32
    return %c0_i32, %c0_i32_0 : i32, i32
  }
  func.func @transform_5(%arg0: i32) -> (i32, i32) {
    %c0_i32 = arith.constant 0 : i32
    %c0_i32_0 = arith.constant 0 : i32
    %c0_i32_1 = arith.constant 0 : i32
    return %c0_i32, %c0_i32_0 : i32, i32
  }
  func.func @transform_6(%arg0: i32) -> (i32, i32) {
    %c0_i32 = arith.constant 0 : i32
    %c0_i32_0 = arith.constant 0 : i32
    %c0_i32_1 = arith.constant 0 : i32
    return %c0_i32, %c0_i32_0 : i32, i32
  }
  func.func @transform_7(%arg0: i32) -> (i32, i32) {
    %c0_i32 = arith.constant 0 : i32
    %c0_i32_0 = arith.constant 0 : i32
    %c0_i32_1 = arith.constant 0 : i32
    return %c0_i32, %c0_i32_0 : i32, i32
  }
  func.func @transform_8(%arg0: i32) -> (i32, i32) {
    %c0_i32 = arith.constant 0 : i32
    %c0_i32_0 = arith.constant 0 : i32
    %c0_i32_1 = arith.constant 0 : i32
    return %c0_i32, %c0_i32_0 : i32, i32
  }
  func.func @transform_9(%arg0: i32) -> (i32, i32) {
    %c0_i32 = arith.constant 0 : i32
    %c0_i32_0 = arith.constant 0 : i32
    return %c0_i32, %arg0 : i32, i32
  }
}

</mosaic_0001>

<bundles_post_ra>
// kernel: tpu_custom_call.1
= control target key start
LH: loop header
LB: loop body
LE: loop exit
PB: predicated region body
PF: predicated region fallthrough
CT: control target
= control target key end

     0   :  { %s653_s0 = inlined_call_operand.vmem [shape: f32[16,8], index: 0, kind: input, shape index: {}]   ;;  %s654_s1 = inlined_call_operand.vmem [shape: f32[16,8], index: 1, kind: input, shape index: {}]   ;;  %s655_s2 = inlined_call_operand.vmem [shape: bf16[32,16], index: 2, kind: input, shape index: {}]   ;;  %s656_s3 = inlined_call_operand.vmem [shape: bf16[32,16], index: 3, kind: input, shape index: {}]   ;;  %s657_s4 = inlined_call_operand.vmem [shape: f32[32,1], index: 4, kind: input, shape index: {}]   ;;  %s658_s5 = inlined_call_operand.vmem [shape: bf16[32,32], index: 5, kind: input, shape index: {}]   ;;  %s659_s6 = inlined_call_operand.vmem [shape: f32[32,1], index: 6, kind: input, shape index: {}]   ;;  %s660_s7 = inlined_call_operand.vmem [shape: f32[1,32], index: 7, kind: input, shape index: {}]   ;;  %s661_s8 = inlined_call_operand.<no memory space> [shape: f32[1,1], index: 8, kind: input, shape index: {}]   ;;  %s662_s9 = inlined_call_operand.hbm [shape: f32[1,8], index: 9, kind: output, shape index: {}]  }
   0x1   :  { %v14_v0 = vstv %s661_s8 }
   0x2   :  { %15 = vst [vmem:[#allocation2] sm:$0x1] %v14_v0 }
   0x3   :  { %v39_v1 = vld [vmem:[%s654_s1] sm:$0xff]  ;;  %v40_v2 = vld [vmem:[%s654_s1 + $0x8] sm:$0xff]  ;;  %vm60_vm0 = vcmask 130048   ;;  %v519_v5 = vmov 0   ;;  %v183_v12 = vld [vmem:[%s657_s4 + $0x10] sm:$0xff] }
   0x4   :  { %v41_v3 = vpack.c.bf16 %v40_v2, %v39_v1  ;;  %v489_v4 = vld [vmem:[%s656_s3] sm:$0xff]   ;;  %487 = vset.pattern.permute.xlu0 %v519_v5  ;;  %488 = vset.pattern.permute.xlu1 %v519_v5  ;;  %v490_v6 = vld [vmem:[%s656_s3 + $0x8] sm:$0xff]   ;;  %v184_v14 = vld [vmem:[%s657_s4 + $0x18] sm:$0xff] }
   0x5   :  { %v36_v7 = vld [vmem:[%s653_s0] sm:$0xff]  ;;  %443 = vmatprep.mubr.msk.bf16.mxu0 %vm60_vm0, %v489_v4  ;;  %v37_v8 = vld [vmem:[%s653_s0 + $0x8] sm:$0xff]  ;;  %197 = vperm.xlu1 %488, %v183_v12  }
   0x6   :  { %441 = vmatprep.subr.bf16.mxu0 %v41_v3  ;;  %v38_v9 = vpack.c.bf16 %v37_v8, %v36_v7  ;;  %v491_v10 = vld [vmem:[%s655_s2] sm:$0xff]   ;;  %v182_v13 = vld [vmem:[%s657_s4 + $0x8] sm:$0xff] }
   0x7   :  { %442 = vmatpush3.bf16.msra.mxu0 %v41_v3  ;;  %v181_v11 = vld [vmem:[%s657_s4] sm:$0xff] }
   0x8   :  { %447 = vmatprep.subr.bf16.mxu0 %v38_v9  ;;  %187 = vperm.xlu0 %487, %v181_v11  }
   0xa   :  { %444 = vmatmul.mubr.msk.bf16.vlgmr.msra.gmra.mrb[0].mxu0 %vm60_vm0, %v490_v6 }
   0xb   :  { %448 = vmatpush3.bf16.msra.mxu0 %v38_v9  ;;  %449 = vmatprep.mubr.msk.bf16.mxu0 %vm60_vm0, %v491_v10 }
   0xc   :  { %16 = vsyncpa [#allocation4], 0  ;;  %192 = vperm.xlu0 %487, %v182_v13   ;;  %v219_v15 = vld [vmem:[%s659_s6] sm:$0xff]  ;;  %202 = vperm.xlu1 %488, %v184_v14   ;;  %v220_v16 = vld [vmem:[%s659_s6 + $0x8] sm:$0xff]  ;;  %vm253_vm1 = vcmask 261120   ;;  %v520_v41 = vmov 0.0|0.0   ;;  %v320_v62 = vlaneseq }
   0xd   :  { %v492_v17 = vld [vmem:[%s655_s2 + $0x8] sm:$0xff]   ;;  %v221_v18 = vld [vmem:[%s659_s6 + $0x10] sm:$0xff]  ;;  %v222_v19 = vld [vmem:[%s659_s6 + $0x18] sm:$0xff]  ;;  %vm521_vm2 = vmmov 0   ;;  %v522_v42 = vmov 0.0   ;;  %s523_s19 = smov [#allocation3]  }
   0xe   :  { %v314_v20 = vld [vmem:[#allocation2] sm:$0x1]  ;;  %v494_v40 = vld [vmem:[%s658_s5 + $0x8] sm:$0xff]   ;;  %v321_v63 = vshrl.u32 %v320_v62, 7  ;;  %s405_s1 = sshll.u32 %s523_s19, 4  ;;  %vm397_vm3 = vcmask 57344   ;;  %s406_s1 = int_to_ptr.vmem [resolvable:$true] %s405_s1 }
   0xf   :  { %v493_v21 = vld [vmem:[%s658_s5] sm:$0xff]   ;;  %s495_s20 = scalar_lea.vmem %s406_s1, 16  ;;  %s499_s21 = scalar_lea.vmem %s406_s1, 32 }
  0x10   :  { %225 = vperm.xlu0 %487, %v219_v15   ;;  %230 = vperm.xlu1 %488, %v220_v16   ;;  %v313_v61 = vld [vmem:[%s660_s7] sm:$0x1]  ;;  %v322_v0 = vsub.s32 0, %v321_v63  ;;  %p496_p0 = scmp.ne.s32.totalorder %s406_s1, %s495_s20  ;;  %p500_p1 = scmp.lt.s32.totalorder %s406_s1, %s406_s1 }
  0x11   :  { %457 = vmatprep.mubr.msk.bf16.mxu1 %vm253_vm1, %v493_v21  ;;  %p501_p2 = scmp.lt.s32.totalorder %s499_s21, %s495_s20 }
  0x13   :  { %p502_p3 = por %p501_p2, %p500_p1 }
  0x14   :  { %235 = vperm.xlu0 %487, %v221_v18   ;;  %240 = vperm.xlu1 %488, %v222_v19  }
  0x15   :  { %p503_p4 = pnand %p502_p3, %p496_p0 }
  0x16   :  { %450 = vmatmul.mubr.msk.bf16.vlgmr.msra.gmra.mrb[0].mxu0 %vm60_vm0, %v492_v17 }
  0x18   :  { %317 = vperm.xlu0 %487, %v314_v20  }
  0x84   :  { %v198_v22 = vpop.permute.xlu1 %197 }
  0x87   :  { %v188_v23 = vpop.permute.xlu0 %187 }
  0x8b   :  { %v203_v27 = vpop.permute.xlu1 %202  ;;  %v193_v30 = vpop.permute.xlu0 %192 }
  0x8f   :  { %v226_v43 = vpop.permute.xlu0 %225  ;;  %v231_v44 = vpop.permute.xlu1 %230 }
  0x93   :  { %v236_v45 = vpop.permute.xlu0 %235  ;;  %v241_v49 = vpop.permute.xlu1 %240 }
  0x97   :  { %v318_v1 = vpop.permute.xlu0 %317 }
  0x98   :  { %v323_v2 = vrot.slane %v318_v1, %v322_v0 }
  0xe9   :  { %v451_v24 = vpop.f32.mrb[0].mxu0 }
  0xea   :  { %v207_v25 = vadd.f32 %v451_v24, %v198_v22  ;;  %v166_v26 = vpop.f32.mrb[1].mxu0 }
  0xeb   :  { %v205_v28 = vadd.f32 %v188_v23, %v166_v26  ;;  %v452_v29 = vpop.f32.mrb[2].mxu0 }
  0xec   :  { %v208_v31 = vadd.f32 %v452_v29, %v203_v27  ;;  %v169_v32 = vpop.f32.mrb[3].mxu0  ;;  %v211_v34 = vmax.f32 %v207_v25, 0.0 }
  0xed   :  { %v206_v33 = vadd.f32 %v193_v30, %v169_v32  ;;  %v209_v36 = vmax.f32 %v205_v28, 0.0 }
  0xee   :  { %v212_v35 = vmax.f32 %v208_v31, 0.0 }
  0xef   :  { %v210_v37 = vmax.f32 %v206_v33, 0.0 }
  0xf0   :  { %v218_v38 = vpack.c.bf16 %v212_v35, %v211_v34 }
  0xf1   :  { %v217_v39 = vpack.c.bf16 %v210_v37, %v209_v36 }
  0xf3   :  { %453 = vmatprep.subr.bf16.mxu1 %v217_v39 }
  0xf4   :  { %454 = vmatpush3.bf16.msra.mxu1 %v217_v39 }
  0xf5   :  { %455 = vmatprep.subr.bf16.mxu1 %v218_v38 }
  0xf8   :  { %456 = vmatpush3.bf16.msra.mxu1 %v218_v38 }
  0xf9   :  { %472 = vmatprep.subr.bf16.mxu1 %v520_v41 }
  0xfb   :  { %458 = vmatmul.mubr.msk.bf16.vlgmr.msra.gmra.mrb[0].mxu1 %vm253_vm1, %v494_v40 }
  0xfc   :  { %469 = vmatprep.mubr.msk.f32.mxu1 %vm521_vm2, %v522_v42 }
 0x1ce   :  { %v459_v46 = vpop.f32.mrb[0].mxu1 }
 0x1cf   :  { %v303_v47 = vadd.f32 %v459_v46, %v236_v45  ;;  %v294_v48 = vpop.f32.mrb[1].mxu1 }
 0x1d0   :  { %v295_v50 = vadd.f32 %v294_v48, %v226_v43  ;;  %v460_v51 = vpop.f32.mrb[2].mxu1 }
 0x1d1   :  { %v306_v52 = vadd.f32 %v460_v51, %v241_v49  ;;  %v297_v53 = vpop.f32.mrb[3].mxu1  ;;  %v311_v55 = vmax.f32 %v303_v47, 0.0 }
 0x1d2   :  { %v298_v54 = vadd.f32 %v297_v53, %v231_v44  ;;  %v309_v57 = vmax.f32 %v295_v50, 0.0 }
 0x1d3   :  { %v312_v56 = vmax.f32 %v306_v52, 0.0 }
 0x1d4   :  { %v310_v58 = vmax.f32 %v298_v54, 0.0 }
 0x1d5   :  { %v476_v59 = vpack.c.bf16 %v312_v56, %v311_v55 }
 0x1d6   :  { %v473_v60 = vpack.c.bf16 %v310_v58, %v309_v57 }
 0x1d8   :  { %474 = vmatpush3.bf16.msra.mxu1 %v473_v60 }
 0x1d9   :  { %475 = vmatprep.subr.bf16.mxu1 %v520_v41 }
 0x1dc   :  { %477 = vmatpush3.bf16.msra.mxu1 %v476_v59 }
 0x1df   :  { %470 = vmatmul.mubr.msk.f32.vlgmr.msra.gmra.mrb[4].mxu1 %vm253_vm1, %v313_v61 }
 0x2b2   :  { %v393_v3 = vpop.f32.mrb[4].mxu1 }
 0x2b3   :  { %v394_v4 = vadd.f32 %v393_v3, %v323_v2  ;;  %v471_v5 = vpop.f32.mrb[5].mxu1 }
 0x2b5   :  { %398 = vst.msk [vmem:[#allocation3] sm:$0x1] %vm397_vm3, %v394_v4 }
 0x2b6   :  { %506 = shalt.err (!%p503_p4)
}
 0x2b7   :  { %s507_s23 = scalar_lea.hbm %s662_s9, 16 }
 0x2b8   :  { %p508_p5 = scmp.ne.s32.totalorder %s662_s9, %s507_s23  ;;  %p511_p6 = scmp.lt.u32.totalorder %s507_s23, %s662_s9 }
 0x2ba   :  { %p513_p7 = pnand %p511_p6, %p508_p5 }
 0x2bc   :  { %516 = shalt.err (!%p513_p7)
}
 0x2bd   :  { %408 = dma.vmem_to_hbm [thread:$0]  %s406_s1, 16, %s662_s9, [#allocation4]  }
 0x2be   :  { %517 = dma.done.wait [#allocation4], 16  }
 0x2bf   :  { %518 = vsyncadd [#allocation4], 4294967280 }
 0x2c0   :  { %412 = vsyncpa [#allocation4], 1 }

</bundles_post_ra>
